<compile_context>
chip_gen: v7x
topology: tpu7x:2x2x1
jax: 0.10.0
libtpu: 0.0.40
codegen_flags: <defaults>
</compile_context>

<pallas_src>
import functools

import jax
import jax.numpy as jnp
from jax.experimental import pallas as pl
from jax.experimental.pallas import tpu as pltpu

_EPS = 1e-5


# ----------------------------------------------------------------------------
# Device-aware budgets & tiling
# ----------------------------------------------------------------------------
def _vmem_capacity_bytes():
    try:
        cap = int(getattr(pltpu.get_tpu_info(), "vmem_capacity_bytes", 0))
        if cap > 0:
            return cap
    except Exception:
        pass
    return 64 * 1024 * 1024  # conservative default (v7x per-TC VMEM)


def _budgets():
    cap = _vmem_capacity_bytes()
    # Total scoped VMEM: ~48 MiB on v7x (64 MiB physical), ~96 MiB on v5e/v6e.
    vmem_limit = min(int(cap * 0.75), 112 * 1024 * 1024)
    # Double-buffered streaming I/O budget per phase: ~40 MiB v7x / ~80 MiB v5e-v6e.
    io_budget = int(cap * 0.625)
    # Keep tiles modest on v7x; let v5e/v6e run much larger lane tiles.
    lane_cap = 2048 if cap <= 64 * 1024 * 1024 else 8192
    return vmem_limit, io_budget, lane_cap


def _round_up(x, m):
    return ((x + m - 1) // m) * m


def _tile_plan(total_lanes, bytes_per_lane, budget_bytes, lane_cap):
    """Split `total_lanes` into n equal 128-aligned tiles that fit the budget.

    Returns (tile, n_tiles, padded_total) with padded_total = tile * n_tiles
    >= total_lanes.  The wrapper zero-pads up to padded_total (harmless for a
    sum; the divisor uses the true extent).
    """
    max_lanes = budget_bytes // max(1, bytes_per_lane)
    max_lanes = min(max_lanes, lane_cap)
    # Lane granularity floor: cannot go below one 128-lane vreg row even if the
    # budget would ask for less (extreme N*C edge case -> accepted overshoot).
    max_lanes = max(128, (max_lanes // 128) * 128)
    n = -(-total_lanes // max_lanes)                       # ceil div
    tile = _round_up(-(-total_lanes // n), 128)
    return tile, n, tile * n


# ----------------------------------------------------------------------------
# Kernels
# ----------------------------------------------------------------------------
def _pool_sum_kernel(x_ref, psum_ref):
    # x_ref:    (N, c_tile, TILE_S) in the input's native dtype (zero-padded).
    # psum_ref: (N, c_tile) f32, resident across the spatial (reduction) axis.
    @pl.when(pl.program_id(1) == 0)
    def _():
        psum_ref[...] = jnp.zeros_like(psum_ref)

    # f32-accumulating reduce; avoids materializing a full f32 copy of the tile.
    # TODO(synk): on v7x this reduce could run on the otherwise-idle MXU
    # (native-dtype tile contracted against a ones vector, f32 accumulate).
    psum_ref[...] += jnp.sum(x_ref[...], axis=-1, dtype=jnp.float32)


def _head_kernel(psum_ref, w_ref, b_ref, y_ref, *, inv_hw):
    # psum_ref: (N, C_in) f32 spatial sums; w_ref: (C_in, C_out) f32 BN-folded
    # weight; b_ref: (1, C_out) f32 BN-folded bias; y_ref: (N, C_out) f32.
    pooled = psum_ref[...] * jnp.float32(inv_hw)
    y = jnp.dot(pooled, w_ref[...], preferred_element_type=jnp.float32)
    y_ref[...] = jnp.maximum(y + b_ref[...], 0.0)


def _broadcast_kernel(y_ref, o_ref):
    # y_ref: (N, C_out) f32 resident; o_ref: (N, C_out, TILE_O) output tile.
    # Cast the tiny vector BEFORE broadcasting so the full tile never exists in
    # f32 when the output dtype is narrower; phase 2 is then pure output DMA.
    y = y_ref[...].astype(o_ref.dtype)
    o_ref[...] = jnp.broadcast_to(y[:, :, None], o_ref.shape)


# ----------------------------------------------------------------------------
# Wrapper
# ----------------------------------------------------------------------------
def aspp_pooling(x, weight, gamma, beta, running_mean, running_var):
    """x: (N, C_in, H, W); weight: (C_out, C_in). Returns (N, C_out, H, W)."""
    N, C_in, H, W = x.shape
    C_out = weight.shape[0]
    HW = H * W
    vmem_limit, io_budget, lane_cap = _budgets()

    # Fold BN (inference semantics, running stats) into the 1x1 conv.
    # TODO(synk): PyTorch BN in training mode uses batch statistics; this
    # implements eval-mode BN with running stats / affine params.
    scale = (gamma.astype(jnp.float32)
             * jax.lax.rsqrt(running_var.astype(jnp.float32) + _EPS))       # (C_out,)
    w_folded = (weight.astype(jnp.float32) * scale[:, None]).T              # (C_in, C_out)
    bias = (beta.astype(jnp.float32)
            - running_mean.astype(jnp.float32) * scale).reshape(1, C_out)

    # --- phase 1: tiled global-sum reduction over the spatial axis ----------
    # Channel split provides the megacore-parallel axis when possible.
    n_c = 2 if (C_in % 256 == 0) else 1
    c_tile = C_in // n_c

    in_bytes_per_lane = 2 * N * c_tile * x.dtype.itemsize          # double-buffered
    tile_s, n_s, hw_pad_in = _tile_plan(HW, in_bytes_per_lane, io_budget, lane_cap)

    x3 = x.reshape(N, C_in, HW)
    if hw_pad_in > HW:                                             # zeros: harmless to the sum
        x3 = jnp.pad(x3, ((0, 0), (0, 0), (0, hw_pad_in - HW)))

    psum = pl.pallas_call(
        _pool_sum_kernel,
        out_shape=jax.ShapeDtypeStruct((N, C_in), jnp.float32),
        grid=(n_c, n_s),
        in_specs=[pl.BlockSpec((N, c_tile, tile_s), lambda c, s: (0, c, s))],
        out_specs=pl.BlockSpec((N, c_tile), lambda c, s: (0, c)),
        compiler_params=pltpu.CompilerParams(
            dimension_semantics=("parallel", "arbitrary"),
            vmem_limit_bytes=vmem_limit),
    )(x3)

    # --- head: mean -> BN-folded 1x1 conv + bias + ReLU (computed once) -----
    y = pl.pallas_call(
        functools.partial(_head_kernel, inv_hw=1.0 / HW),
        out_shape=jax.ShapeDtypeStruct((N, C_out), jnp.float32),
        in_specs=[pl.BlockSpec(memory_space=pltpu.MemorySpace.VMEM)] * 3,
        out_specs=pl.BlockSpec(memory_space=pltpu.MemorySpace.VMEM),
        compiler_params=pltpu.CompilerParams(vmem_limit_bytes=vmem_limit),
    )(psum, w_folded, bias)

    # --- phase 2: lane-dense streaming broadcast store ----------------------
    out_bytes_per_lane = 2 * N * C_out * x.dtype.itemsize
    tile_o, n_o, hw_pad_out = _tile_plan(HW, out_bytes_per_lane, io_budget, lane_cap)

    out3 = pl.pallas_call(
        _broadcast_kernel,
        out_shape=jax.ShapeDtypeStruct((N, C_out, hw_pad_out), x.dtype),
        grid=(n_o,),
        in_specs=[pl.BlockSpec((N, C_out), lambda s: (0, 0))],
        out_specs=pl.BlockSpec((N, C_out, tile_o), lambda s: (0, 0, s)),
        compiler_params=pltpu.CompilerParams(
            dimension_semantics=("parallel",),
            vmem_limit_bytes=vmem_limit),
    )(y)

    if hw_pad_out > HW:
        out3 = out3[:, :, :HW]
    return out3.reshape(N, C_out, H, W)       # free layout plumbing back to NCHW


# ----------------------------------------------------------------------------
# Reference & test
# ----------------------------------------------------------------------------
def _reference(x, weight, gamma, beta, running_mean, running_var):
    pooled = jnp.mean(x, axis=(2, 3))                                   # (N, C_in)
    y = pooled @ weight.T                                               # (N, C_out)
    y = (y - running_mean) * jax.lax.rsqrt(running_var + _EPS) * gamma + beta
    y = jnp.maximum(y, 0.0)
    return jnp.broadcast_to(y[:, :, None, None],
                            (x.shape[0], weight.shape[0], x.shape[2], x.shape[3]))


if __name__ == "__main__":
    key = jax.random.PRNGKey(0)
    k_x, k_w, k_g, k_b, k_m, k_v = jax.random.split(key, 6)

    N, C_in, C_out, H, W = 2, 4, 8, 16, 16

    x = jax.random.normal(k_x, (N, C_in, H, W), dtype=jnp.float32)
    weight = jax.random.normal(k_w, (C_out, C_in), dtype=jnp.float32) * 0.1
    gamma = 1.0 + 0.1 * jax.random.normal(k_g, (C_out,), dtype=jnp.float32)
    beta = 0.1 * jax.random.normal(k_b, (C_out,), dtype=jnp.float32)
    running_mean = 0.05 * jax.random.normal(k_m, (C_out,), dtype=jnp.float32)
    running_var = jnp.abs(1.0 + 0.1 * jax.random.normal(
        k_v, (C_out,), dtype=jnp.float32))

    out = jax.block_until_ready(
        aspp_pooling(x, weight, gamma, beta, running_mean, running_var))
    ref = _reference(x, weight, gamma, beta, running_mean, running_var)
    assert out.shape == (N, C_out, H, W)
    assert jnp.allclose(out, ref, atol=1e-5, rtol=1e-5), \
        float(jnp.max(jnp.abs(out - ref)))

    # Non-128-multiple spatial extent (realistic ASPP maps are odd-sized):
    # exercises the lane-padding path fixed per the perf review.
    H2 = W2 = 9
    x2 = jax.random.normal(k_x, (N, C_in, H2, W2), dtype=jnp.float32)
    out2 = jax.block_until_ready(
        aspp_pooling(x2, weight, gamma, beta, running_mean, running_var))
    ref2 = _reference(x2, weight, gamma, beta, running_mean, running_var)
    assert out2.shape == (N, C_out, H2, W2)
    assert jnp.allclose(out2, ref2, atol=1e-5, rtol=1e-5), \
        float(jnp.max(jnp.abs(out2 - ref2)))

    print("KERNEL_OK")
</pallas_src>

<mosaic_0001>
module attributes {stable_mosaic.version = 11 : i64} {
  func.func @_pool_sum_kernel(%arg0: i32, %arg1: i32, %arg2: memref<2x4x256xf32, #tpu.memory_space<vmem>>, %arg3: memref<2x4xf32, #tpu.memory_space<vmem>>) attributes {dimension_semantics = [#tpu.dimension_semantics<parallel>, #tpu.dimension_semantics<arbitrary>], iteration_bounds = array<i64: 1, 1>, scalar_prefetch = 0 : i64, scratch_operands = 0 : i64, tpu.core_type = #tpu.core_type<tc>, window_params = [{transform_indices = @transform_0, window_bounds = array<i64: 2, 4, 256>}, {transform_indices = @transform_1, window_bounds = array<i64: 2, 4>}]} {
    %c0_i32 = arith.constant 0 : i32
    %0 = arith.cmpi eq, %arg1, %c0_i32 : i32
    %1 = arith.extui %0 : i1 to i32
    %c0_i32_0 = arith.constant 0 : i32
    %2 = arith.cmpi ne, %1, %c0_i32_0 : i32
    scf.if %2 {
      %cst_7 = arith.constant 0.000000e+00 : f32
      %8 = vector.broadcast %cst_7 : f32 to vector<2x4xf32>
      %c0_8 = arith.constant 0 : index
      %c0_9 = arith.constant 0 : index
      %9 = vector.load %arg3[%c0_8, %c0_9] : memref<2x4xf32, #tpu.memory_space<vmem>>, vector<2x4xf32>
      tpu.vector_store %arg3[%c0_8, %c0_9], %8 {strides = array<i32>} : memref<2x4xf32, #tpu.memory_space<vmem>>, vector<2x4xf32>,
    } else {
    }
    %c0 = arith.constant 0 : index
    %c0_1 = arith.constant 0 : index
    %3 = vector.load %arg3[%c0, %c0_1] : memref<2x4xf32, #tpu.memory_space<vmem>>, vector<2x4xf32>
    %c0_2 = arith.constant 0 : index
    %c0_3 = arith.constant 0 : index
    %c0_4 = arith.constant 0 : index
    %4 = vector.load %arg2[%c0_2, %c0_3, %c0_4] : memref<2x4x256xf32, #tpu.memory_space<vmem>>, vector<2x4x256xf32>
    %cst = arith.constant dense<0.000000e+00> : vector<2x4xf32>
    %5 = vector.multi_reduction <add>, %4, %cst [2] : vector<2x4x256xf32> to vector<2x4xf32>
    %6 = arith.addf %3, %5 : vector<2x4xf32>
    %c0_5 = arith.constant 0 : index
    %c0_6 = arith.constant 0 : index
    %7 = vector.load %arg3[%c0_5, %c0_6] : memref<2x4xf32, #tpu.memory_space<vmem>>, vector<2x4xf32>
    tpu.vector_store %arg3[%c0_5, %c0_6], %6 {strides = array<i32>} : memref<2x4xf32, #tpu.memory_space<vmem>>, vector<2x4xf32>,
    return
  }
  func.func @transform_0(%arg0: i32, %arg1: i32) -> (i32, i32, i32) {
    %c0_i32 = arith.constant 0 : i32
    %c0_i32_0 = arith.constant 0 : i32
    return %c0_i32, %arg0, %arg1 : i32, i32, i32
  }
  func.func @transform_1(%arg0: i32, %arg1: i32) -> (i32, i32) {
    %c0_i32 = arith.constant 0 : i32
    %c0_i32_0 = arith.constant 0 : i32
    return %c0_i32, %arg0 : i32, i32
  }
}

</mosaic_0001>

<bundles_post_ra>
// kernel: tpu_custom_call.1
= control target key start
LH: loop header
LB: loop body
LE: loop exit
PB: predicated region body
PF: predicated region fallthrough
CT: control target
= control target key end

     0   :  { %6 = vsyncpa [#allocation3], 0  ;;  %s178_s0 = inlined_call_operand.hbm [shape: f32[2,4,256], index: 0, kind: input, shape index: {}]   ;;  %s179_s1 = inlined_call_operand.hbm [shape: f32[2,4], index: 1, kind: output, shape index: {}]  }
   0x1   :  { %7 = vsyncpa [#allocation4], 0  ;;  %s137_s6 = smov [#allocation2]   ;;  %s89_s10 = scalar_lea.hbm %s178_s0, 256 }
   0x2   :  { %s13_s7 = sshll.u32 %s137_s6, 4  ;;  %p90_p0 = scmp.ne.s32.totalorder %s178_s0, %s89_s10  ;;  %s14_s7 = int_to_ptr.vmem [resolvable:$true] %s13_s7 }
   0x3   :  { %p93_p1 = scmp.lt.u32.totalorder %s89_s10, %s178_s0 }
   0x5   :  { %p95_p2 = pnand %p93_p1, %p90_p0 }
   0x7   :  { %98 = shalt.err (!%p95_p2)
}
   0x8   :  { %s99_s15 = scalar_lea.vmem %s14_s7, 256  ;;  %p104_p4 = scmp.lt.s32.totalorder %s14_s7, %s14_s7 }
   0x9   :  { %p100_p3 = scmp.ne.s32.totalorder %s14_s7, %s99_s15  ;;  %p105_p5 = scmp.lt.s32.totalorder %s99_s15, %s99_s15 }
   0xb   :  { %p106_p6 = por %p105_p5, %p104_p4 }
   0xd   :  { %p107_p7 = pnand %p106_p6, %p100_p3 }
   0xf   :  { %110 = shalt.err (!%p107_p7)
}
  0x10   :  { %s138_s16 = smov 128   ;;  %s139_s17 = smov 8  }
  0x11   :  { %19 = dma.hbm_to_vmem [thread:$0]  %s178_s0, 256, %s14_s7, [#allocation3], %s138_s16, %s138_s16, %s139_s17  }
  0x12   :  { %133 = dma.done.wait [#allocation3], 256  }
  0x13   :  { %134 = vsyncadd [#allocation3], 4294967040  ;;  %vm27_vm0 = vcmask 25600   ;;  %v140_v0 = vmov 0.0   ;;  %vm38_vm1 = vcmask 1043456   ;;  %v30_v1 = vld [vmem:[#allocation2] sm:$0xff]  ;;  %v51_v11 = vlaneseq }
  0x14   :  { %28 = vst.msk [vmem:[#allocation5] sm:$0x3] %vm27_vm0, %v140_v0  ;;  %v31_v2 = vld [vmem:[#allocation2 + $0x8] sm:$0xff]  ;;  %v34_v3 = vcombine.high %v30_v1, %v30_v1  ;;  %v39_v4 = vsel %vm38_vm1, %v30_v1, 0.0  ;;  %vm61_vm2 = vcmask 1041409   ;;  %s141_s0 = smov [#allocation5]  }
  0x15   :  { %v35_v5 = vcombine.high %v31_v2, %v31_v2  ;;  %v44_v7 = vsel %vm38_vm1, %v31_v2, 0.0  ;;  %v52_v12 = vand.u32 127, %v51_v11  ;;  %v54_v13 = vshrl.u32 %v51_v11, 7  ;;  %s73_s20 = sshll.u32 %s141_s0, 4  ;;  %s74_s20 = int_to_ptr.vmem [resolvable:$true] %s73_s20 }
  0x16   :  { %v40_v6 = vsel %vm38_vm1, %v34_v3, 0.0  ;;  %s111_s21 = scalar_lea.vmem %s74_s20, 32  ;;  %p116_p9 = scmp.lt.s32.totalorder %s74_s20, %s74_s20 }
  0x17   :  { %v45_v8 = vsel %vm38_vm1, %v35_v5, 0.0  ;;  %v41_v9 = vadd.f32 %v40_v6, %v39_v4  ;;  %v55_v15 = vsub.s32 %v52_v12, %v54_v13  ;;  %p112_p8 = scmp.ne.s32.totalorder %s74_s20, %s111_s21  ;;  %p117_p10 = scmp.lt.s32.totalorder %s111_s21, %s111_s21 }
  0x18   :  { %v46_v10 = vadd.f32 %v45_v8, %v44_v7 }
  0x19   :  { %42 = vadd.xlane.f32.xlu0 %v41_v9  ;;  %p118_p11 = por %p117_p10, %p116_p9 }
  0x1b   :  { %v29_v18 = vld [vmem:[#allocation5] sm:$0x3]  ;;  %p119_p12 = pnand %p118_p11, %p112_p8 }
  0x1d   :  { %47 = vadd.xlane.f32.xlu0 %v46_v10 }
  0xa6   :  { %v43_v14 = vpop.xlane.xlu0 %42 }
  0xa7   :  { %v56_v17 = vrot.slane %v43_v14, %v55_v15 }
  0xaa   :  { %v48_v16 = vpop.xlane.xlu0 %47 }
  0xab   :  { %v60_v19 = vrot.slane %v48_v16, %v55_v15 }
  0xad   :  { %v62_v20 = vsel %vm61_vm2, %v60_v19, %v56_v17 }
  0xae   :  { %v64_v21 = vadd.f32 %v62_v20, %v29_v18 }
  0xb0   :  { %66 = vst.msk [vmem:[#allocation5] sm:$0x3] %vm27_vm0, %v64_v21 }
  0xb1   :  { %122 = shalt.err (!%p119_p12)
}
  0xb2   :  { %s123_s24 = scalar_lea.hbm %s179_s1, 32 }
  0xb3   :  { %p124_p13 = scmp.ne.s32.totalorder %s179_s1, %s123_s24  ;;  %p127_p0 = scmp.lt.u32.totalorder %s123_s24, %s179_s1 }
  0xb5   :  { %p129_p1 = pnand %p127_p0, %p124_p13 }
  0xb7   :  { %132 = shalt.err (!%p129_p1)
}
  0xb8   :  { %76 = dma.vmem_to_hbm [thread:$0]  %s74_s20, 32, %s179_s1, [#allocation4]  }
  0xb9   :  { %135 = dma.done.wait [#allocation4], 32  }
  0xba   :  { %136 = vsyncadd [#allocation4], 4294967264 }
  0xbb   :  { %80 = vsyncpa [#allocation3], 1 }
  0xbc   :  { %81 = vsyncpa [#allocation4], 1 }

</bundles_post_ra>
